<compile_context>
chip_gen: v7x
topology: tpu7x:2x2x1
jax: 0.10.0
libtpu: 0.0.40
codegen_flags: <defaults>
</compile_context>

<pallas_src>
import jax
import jax.numpy as jnp
from jax.experimental import pallas as pl
from jax.experimental.pallas import tpu as pltpu

D_IN, D_H1, D_H2, D_OUT = 512, 256, 128, 16
BN_EPS = 1e-5


def dimred_kernel(x_ref, w1_ref, b1_ref, w2_ref, b2_ref, w3_ref, b3_ref, o_ref):
    # f32 -> bf16 cast inside the kernel (free VPU work hidden under the input
    # DMA) instead of a standalone XLA cast pass in the wrapper.
    x = x_ref[...].astype(jnp.bfloat16)

    # Linear(512,256) + BN (folded into W1/b1) + ReLU   (Dropout = identity, eval)
    h = jnp.dot(x, w1_ref[...], preferred_element_type=jnp.float32)
    h = jnp.maximum(h + b1_ref[...], 0.0).astype(jnp.bfloat16)

    # Linear(256,128) + BN (folded into W2/b2) + ReLU   (Dropout = identity, eval)
    h = jnp.dot(h, w2_ref[...], preferred_element_type=jnp.float32)
    h = jnp.maximum(h + b2_ref[...], 0.0).astype(jnp.bfloat16)

    # Linear(128,16) -> f32 output, stored at its true 16-lane width.
    o_ref[...] = (jnp.dot(h, w3_ref[...], preferred_element_type=jnp.float32)
                  + b3_ref[...])


def _round_up(n, m):
    return ((n + m - 1) // m) * m


def dim_reduction(x, params, *, tm=None):
    """x: (N, 512) float. params: raw (PyTorch-equivalent) params. Returns (N, 16) f32."""
    (w1, b1, g1, be1, m1, v1,
     w2, b2, g2, be2, m2, v2,
     w3, b3) = params
    assert x.ndim == 2 and x.shape[1] == D_IN
    N = x.shape[0]

    if tm is None:
        # Adaptive tile: big batches -> 1024-row tiles; moderate batches -> >=2
        # "parallel" steps (feeds both v7x TCs); tiny batches -> no wasted rows.
        tm = min(1024, max(16, _round_up(pl.cdiv(N, 2), 16)))
    assert tm % 16 == 0, "tm must be a multiple of 16 (bf16 sublane packing)"

    # ---- Fold BatchNorm (eval mode, running stats) into the Linear weights ----
    # Fold in f32; the only lossy step is the bf16 cast of the folded weights
    # (~0.4% relative per layer), validated against the f32 reference below.
    s1 = g1 / jnp.sqrt(v1 + BN_EPS)
    t1 = be1 - m1 * s1
    s2 = g2 / jnp.sqrt(v2 + BN_EPS)
    t2 = be2 - m2 * s2
    w1f = (w1 * s1).astype(jnp.bfloat16)            # (512, 256), column-scaled
    b1f = (b1 * s1 + t1).astype(jnp.float32)        # (1, 256)
    w2f = (w2 * s2).astype(jnp.bfloat16)            # (256, 128)
    b2f = (b2 * s2 + t2).astype(jnp.float32)        # (1, 128)
    w3f = w3.astype(jnp.bfloat16)                   # (128, 16)
    b3f = b3.astype(jnp.float32)                    # (1, 16)

    grid = (pl.cdiv(N, tm),)                        # ragged last block clipped by Pallas
    resident = lambda shape: pl.BlockSpec(shape, lambda i: (0,) * len(shape))

    return pl.pallas_call(
        dimred_kernel,
        out_shape=jax.ShapeDtypeStruct((N, D_OUT), jnp.float32),
        grid=grid,
        in_specs=[
            pl.BlockSpec((tm, D_IN), lambda i: (i, 0)),    # x tile (streamed, f32)
            resident((D_IN, D_H1)), resident((1, D_H1)),   # W1', b1' (VMEM-resident)
            resident((D_H1, D_H2)), resident((1, D_H2)),   # W2', b2'
            resident((D_H2, D_OUT)), resident((1, D_OUT)), # W3,  b3
        ],
        out_specs=pl.BlockSpec((tm, D_OUT), lambda i: (i, 0)),
        compiler_params=pltpu.CompilerParams(
            dimension_semantics=("parallel",),
            vmem_limit_bytes=32 * 1024 * 1024,
        ),
    )(x, w1f, b1f, w2f, b2f, w3f, b3f)


def make_params(key):
    """Deterministic synthetic parameters matching the PyTorch module shapes
    (non-trivial BatchNorm affine + running stats to exercise the folding)."""
    ks = jax.random.split(key, 14)

    def linear(kw, kb, d_in, d_out):
        lim = 1.0 / jnp.sqrt(d_in)
        w = jax.random.uniform(kw, (d_in, d_out), jnp.float32, -lim, lim)
        b = jax.random.uniform(kb, (1, d_out), jnp.float32, -lim, lim)
        return w, b

    def bn(kg, kb_, km, kv, d):
        gamma = jax.random.uniform(kg, (1, d), jnp.float32, 0.5, 1.5)
        beta = 0.1 * jax.random.normal(kb_, (1, d), jnp.float32)
        mean = 0.1 * jax.random.normal(km, (1, d), jnp.float32)
        var = jax.random.uniform(kv, (1, d), jnp.float32, 0.5, 1.5)
        return gamma, beta, mean, var

    w1, b1 = linear(ks[0], ks[1], D_IN, D_H1)
    g1, be1, m1, v1 = bn(ks[2], ks[3], ks[4], ks[5], D_H1)
    w2, b2 = linear(ks[6], ks[7], D_H1, D_H2)
    g2, be2, m2, v2 = bn(ks[8], ks[9], ks[10], ks[11], D_H2)
    w3, b3 = linear(ks[12], ks[13], D_H2, D_OUT)
    return (w1, b1, g1, be1, m1, v1,
            w2, b2, g2, be2, m2, v2,
            w3, b3)


def reference(x, params):
    """Pure-JAX f32 reference matching the PyTorch module in eval mode."""
    (w1, b1, g1, be1, m1, v1,
     w2, b2, g2, be2, m2, v2,
     w3, b3) = params
    h = x @ w1 + b1
    h = (h - m1) / jnp.sqrt(v1 + BN_EPS) * g1 + be1
    h = jnp.maximum(h, 0.0)
    h = h @ w2 + b2
    h = (h - m2) / jnp.sqrt(v2 + BN_EPS) * g2 + be2
    h = jnp.maximum(h, 0.0)
    return h @ w3 + b3


if __name__ == "__main__":
    key = jax.random.PRNGKey(0)
    kx, kp = jax.random.split(key)

    N = 40  # small batch, deliberately NOT a multiple of the tile size
    x = jax.random.normal(kx, (N, D_IN), jnp.float32)
    params = make_params(kp)
    ref = reference(x, params)

    # Adaptive tile (tm=32 here): 2-step "parallel" grid with a ragged last block.
    out = jax.block_until_ready(dim_reduction(x, params))
    assert out.shape == (N, D_OUT)
    err = jnp.max(jnp.abs(out - ref))
    assert jnp.allclose(out, ref, atol=5e-2, rtol=5e-2), f"max err {err}"

    # Explicit small tile: 3-step grid, ragged final block (verifies that the
    # out-of-bounds output rows of the edge block are clipped, per review).
    out2 = jax.block_until_ready(dim_reduction(x, params, tm=16))
    err2 = jnp.max(jnp.abs(out2 - ref))
    assert jnp.allclose(out2, ref, atol=5e-2, rtol=5e-2), f"max err {err2}"

    # Explicit large tile (single ragged block, tm > N).
    out3 = jax.block_until_ready(dim_reduction(x, params, tm=1024))
    err3 = jnp.max(jnp.abs(out3 - ref))
    assert jnp.allclose(out3, ref, atol=5e-2, rtol=5e-2), f"max err {err3}"

    print("KERNEL_OK")
</pallas_src>

<mosaic_0001>
module attributes {stable_mosaic.version = 11 : i64} {
  func.func @dimred_kernel(%arg0: i32, %arg1: memref<32x512xf32, #tpu.memory_space<vmem>>, %arg2: memref<512x256xbf16, #tpu.memory_space<vmem>>, %arg3: memref<1x256xf32, #tpu.memory_space<vmem>>, %arg4: memref<256x128xbf16, #tpu.memory_space<vmem>>, %arg5: memref<1x128xf32, #tpu.memory_space<vmem>>, %arg6: memref<128x16xbf16, #tpu.memory_space<vmem>>, %arg7: memref<1x16xf32, #tpu.memory_space<vmem>>, %arg8: memref<32x16xf32, #tpu.memory_space<vmem>>) attributes {dimension_semantics = [#tpu.dimension_semantics<parallel>], iteration_bounds = array<i64: 2>, scalar_prefetch = 0 : i64, scratch_operands = 0 : i64, tpu.core_type = #tpu.core_type<tc>, window_params = [{transform_indices = @transform_0, window_bounds = array<i64: 32, 512>}, {pipeline_mode = #tpu.pipeline_mode<synchronous>, transform_indices = @transform_1, window_bounds = array<i64: 512, 256>}, {pipeline_mode = #tpu.pipeline_mode<synchronous>, transform_indices = @transform_2, window_bounds = array<i64: 1, 256>}, {pipeline_mode = #tpu.pipeline_mode<synchronous>, transform_indices = @transform_3, window_bounds = array<i64: 256, 128>}, {pipeline_mode = #tpu.pipeline_mode<synchronous>, transform_indices = @transform_4, window_bounds = array<i64: 1, 128>}, {pipeline_mode = #tpu.pipeline_mode<synchronous>, transform_indices = @transform_5, window_bounds = array<i64: 128, 16>}, {pipeline_mode = #tpu.pipeline_mode<synchronous>, transform_indices = @transform_6, window_bounds = array<i64: 1, 16>}, {transform_indices = @transform_7, window_bounds = array<i64: 32, 16>}]} {
    %c0 = arith.constant 0 : index
    %c0_0 = arith.constant 0 : index
    %0 = vector.load %arg1[%c0, %c0_0] : memref<32x512xf32, #tpu.memory_space<vmem>>, vector<32x512xf32>
    %1 = arith.truncf %0 : vector<32x512xf32> to vector<32x512xbf16>
    %c0_1 = arith.constant 0 : index
    %c0_2 = arith.constant 0 : index
    %2 = vector.load %arg2[%c0_1, %c0_2] : memref<512x256xbf16, #tpu.memory_space<vmem>>, vector<512x256xbf16>
    %cst = arith.constant dense<0.000000e+00> : vector<32x256xf32>
    %3 = tpu.matmul %1, %2, %cst {dimension_numbers = #tpu.dot_dimension_numbers<[1], [0], [0], [1], [0, 0, 1, 1], [], []>} : vector<32x512xbf16>, vector<512x256xbf16>, vector<32x256xf32> -> vector<32x256xf32>
    %c0_3 = arith.constant 0 : index
    %c0_4 = arith.constant 0 : index
    %4 = vector.load %arg3[%c0_3, %c0_4] : memref<1x256xf32, #tpu.memory_space<vmem>>, vector<1x256xf32>
    %5 = vector.broadcast %4 : vector<1x256xf32> to vector<32x256xf32>
    %6 = arith.addf %3, %5 : vector<32x256xf32>
    %cst_5 = arith.constant 0.000000e+00 : f32
    %7 = vector.broadcast %cst_5 : f32 to vector<32x256xf32>
    %8 = arith.maximumf %6, %7 : vector<32x256xf32>
    %9 = arith.truncf %8 : vector<32x256xf32> to vector<32x256xbf16>
    %c0_6 = arith.constant 0 : index
    %c0_7 = arith.constant 0 : index
    %10 = vector.load %arg4[%c0_6, %c0_7] : memref<256x128xbf16, #tpu.memory_space<vmem>>, vector<256x128xbf16>
    %cst_8 = arith.constant dense<0.000000e+00> : vector<32x128xf32>
    %11 = tpu.matmul %9, %10, %cst_8 {dimension_numbers = #tpu.dot_dimension_numbers<[1], [0], [0], [1], [0, 0, 1, 1], [], []>} : vector<32x256xbf16>, vector<256x128xbf16>, vector<32x128xf32> -> vector<32x128xf32>
    %c0_9 = arith.constant 0 : index
    %c0_10 = arith.constant 0 : index
    %12 = vector.load %arg5[%c0_9, %c0_10] : memref<1x128xf32, #tpu.memory_space<vmem>>, vector<1x128xf32>
    %13 = vector.broadcast %12 : vector<1x128xf32> to vector<32x128xf32>
    %14 = arith.addf %11, %13 : vector<32x128xf32>
    %cst_11 = arith.constant 0.000000e+00 : f32
    %15 = vector.broadcast %cst_11 : f32 to vector<32x128xf32>
    %16 = arith.maximumf %14, %15 : vector<32x128xf32>
    %17 = arith.truncf %16 : vector<32x128xf32> to vector<32x128xbf16>
    %c0_12 = arith.constant 0 : index
    %c0_13 = arith.constant 0 : index
    %18 = vector.load %arg6[%c0_12, %c0_13] : memref<128x16xbf16, #tpu.memory_space<vmem>>, vector<128x16xbf16>
    %cst_14 = arith.constant dense<0.000000e+00> : vector<32x16xf32>
    %19 = tpu.matmul %17, %18, %cst_14 {dimension_numbers = #tpu.dot_dimension_numbers<[1], [0], [0], [1], [0, 0, 1, 1], [], []>} : vector<32x128xbf16>, vector<128x16xbf16>, vector<32x16xf32> -> vector<32x16xf32>
    %c0_15 = arith.constant 0 : index
    %c0_16 = arith.constant 0 : index
    %20 = vector.load %arg7[%c0_15, %c0_16] : memref<1x16xf32, #tpu.memory_space<vmem>>, vector<1x16xf32>
    %21 = vector.broadcast %20 : vector<1x16xf32> to vector<32x16xf32>
    %22 = arith.addf %19, %21 : vector<32x16xf32>
    %c0_17 = arith.constant 0 : index
    %c0_18 = arith.constant 0 : index
    %23 = vector.load %arg8[%c0_17, %c0_18] : memref<32x16xf32, #tpu.memory_space<vmem>>, vector<32x16xf32>
    tpu.vector_store %arg8[%c0_17, %c0_18], %22 {strides = array<i32>} : memref<32x16xf32, #tpu.memory_space<vmem>>, vector<32x16xf32>,
    return
  }
  func.func @transform_0(%arg0: i32) -> (i32, i32) {
    %c0_i32 = arith.constant 0 : i32
    %c0_i32_0 = arith.constant 0 : i32
    return %arg0, %c0_i32 : i32, i32
  }
  func.func @transform_1(%arg0: i32) -> (i32, i32) {
    %c0_i32 = arith.constant 0 : i32
    %c0_i32_0 = arith.constant 0 : i32
    %c0_i32_1 = arith.constant 0 : i32
    return %c0_i32, %c0_i32_0 : i32, i32
  }
  func.func @transform_2(%arg0: i32) -> (i32, i32) {
    %c0_i32 = arith.constant 0 : i32
    %c0_i32_0 = arith.constant 0 : i32
    %c0_i32_1 = arith.constant 0 : i32
    return %c0_i32, %c0_i32_0 : i32, i32
  }
  func.func @transform_3(%arg0: i32) -> (i32, i32) {
    %c0_i32 = arith.constant 0 : i32
    %c0_i32_0 = arith.constant 0 : i32
    %c0_i32_1 = arith.constant 0 : i32
    return %c0_i32, %c0_i32_0 : i32, i32
  }
  func.func @transform_4(%arg0: i32) -> (i32, i32) {
    %c0_i32 = arith.constant 0 : i32
    %c0_i32_0 = arith.constant 0 : i32
    %c0_i32_1 = arith.constant 0 : i32
    return %c0_i32, %c0_i32_0 : i32, i32
  }
  func.func @transform_5(%arg0: i32) -> (i32, i32) {
    %c0_i32 = arith.constant 0 : i32
    %c0_i32_0 = arith.constant 0 : i32
    %c0_i32_1 = arith.constant 0 : i32
    return %c0_i32, %c0_i32_0 : i32, i32
  }
  func.func @transform_6(%arg0: i32) -> (i32, i32) {
    %c0_i32 = arith.constant 0 : i32
    %c0_i32_0 = arith.constant 0 : i32
    %c0_i32_1 = arith.constant 0 : i32
    return %c0_i32, %c0_i32_0 : i32, i32
  }
  func.func @transform_7(%arg0: i32) -> (i32, i32) {
    %c0_i32 = arith.constant 0 : i32
    %c0_i32_0 = arith.constant 0 : i32
    return %arg0, %c0_i32 : i32, i32
  }
}

</mosaic_0001>

<bundles_post_ra>
// kernel: tpu_custom_call.1
= control target key start
LH: loop header
LB: loop body
LE: loop exit
PB: predicated region body
PF: predicated region fallthrough
CT: control target
= control target key end

     0   :  { %12 = vsyncpa [#allocation3], 0  ;;  %s2429_s0 = inlined_call_operand.hbm [shape: f32[40,512], index: 0, kind: input, shape index: {}]   ;;  %s2430_s1 = inlined_call_operand.hbm [shape: bf16[512,256], index: 1, kind: input, shape index: {}]   ;;  %s2431_s2 = inlined_call_operand.vmem [shape: f32[1,256], index: 2, kind: input, shape index: {}]   ;;  %s2432_s3 = inlined_call_operand.hbm [shape: bf16[256,128], index: 3, kind: input, shape index: {}]   ;;  %s2433_s4 = inlined_call_operand.vmem [shape: f32[1,128], index: 4, kind: input, shape index: {}]   ;;  %s2434_s5 = inlined_call_operand.vmem [shape: bf16[128,16], index: 5, kind: input, shape index: {}]   ;;  %s2435_s6 = inlined_call_operand.vmem [shape: f32[1,16], index: 6, kind: input, shape index: {}]   ;;  %s2436_s7 = inlined_call_operand.vmem [shape: f32[40,16], index: 7, kind: output, shape index: {}]  }
   0x1   :  { %14 = vsyncpa [#allocation3 + $0x1], 0 }
   0x2   :  { %15 = vsyncpa [#allocation5], 0  ;;  %s2139_s24 = smov 0   ;;  %s2141_s25 = smov 0  }
   0x3   :  { %s2143_s26 = smov 0   ;;  %s2145_s27 = smov 0  }
   0x4 LB: > { %s2158_s28 = sadd.s32 4294967295, %s2056_s27   ;;  %s2161_s29 = sadd.s32 1, %s2056_s27   ;;  %s2056_s27 = sphi %s2145_s27, %s2459_s27   ;;  %s2052_s26 = sphi %s2143_s26, %s2458_s26   ;;  %s2048_s25 = sphi %s2141_s25, %s2457_s25   ;;  %s2044_s24 = sphi %s2139_s24, %s2456_s24  }
   0x5   : > { %s25_s30 = ssub.s32 %s2056_s27, %s2161_s29  ;;  %s28_s8 = sadd.s32 1, %s2052_s26 }
   0x6   : > { %p26_p0 = scmp.eq.s32.totalorder %s25_s30, 0  ;;  %p35_p1 = scmp.ne.s32.totalorder %s2052_s26, %s2048_s25 }
   0x7   : > { %p36_p2 = scmp.eq.s32.totalorder %s2056_s27, 0  ;;  %p41_p3 = scmp.ne.s32.totalorder %s2048_s25, %s2044_s24 }
   0x8   : > { %s2171_s9 = scalar_select %p26_p0, %s2052_s26, %s28_s8  }
   0x9   : > { %p2173_p4 = por %p36_p2, %p35_p1  ;;  %p2437_p5 = scmp.eq.s32.totalorder %s2158_s28, 0 }
   0xa   : > { %2440 = sst [smem:[#allocation10_spill]] %s2171_s9  ;;  %p191_p6 = scmp.eq.s32.totalorder %s2158_s28, 1 }
   0xb   : > { %s2441_s10 = scalar_select %p2173_p4, 1, 0 }
   0xc   : > { %p1453_p7 = scmp.ge.s32.totalorder %s2056_s27, 1  ;;  %p2182_p8 = por %p2437_p5, %p41_p3 }
   0xd   : > { %p204_p9 = scmp.lt.s32.totalorder %s2056_s27, 3  ;;  %p2187_p10 = por %p191_p6, %p35_p1 }
   0xe   : > { %s2442_s11 = scalar_select %p2182_p8, 1, 0 }
   0xf   : > { %s2443_s12 = scalar_select %p2187_p10, 1, 0 }
  0x10   : > { %p2191_p11 = pnand %p1453_p7, %p204_p9  ;;  %s2090_s14 = smov [#allocation4]  }
  0x11   : > { %s216_s15 = sshll.u32 %s2090_s14, 4  ;;  %s2091_s17 = smov [#allocation6]   ;;  %s217_s15 = int_to_ptr.vmem [resolvable:$true] %s216_s15 }
  0x12   : > { %s2444_s13 = scalar_select %p2191_p11, 1, 0 }
  0x13   : > { %p1667_p12 = pneg %p2191_p11  ;;  %s232_s18 = sshll.u32 %s2091_s17, 4  ;;  %s2203_s18 = int_to_ptr.vmem [resolvable:$true] %s232_s18 }
  0x14   : > { %s1902_s21 = scalar_lea.hbm %s2430_s1, 8192 }
  0x15   : > { %p2199_p13 = pnand %p1667_p12, %p2437_p5  ;;  %p1903_p0 = scmp.ne.s32.totalorder %s2430_s1, %s1902_s21 }
  0x16   : > { %p1909_p6 = scmp.lt.u32.totalorder %s1902_s21, %s2430_s1 }
  0x17   : > { %p1904_p1 = pneg %p2199_p13 }
  0x19   : > { %p1905_p2 = pnand %p1904_p1, %p1903_p0 }
  0x1b   : > { %p1906_p3 = pneg %p1905_p2 }
  0x1d   : > { %p1911_p7 = pnand %p1909_p6, %p1906_p3 }
  0x1f   : > { %1914 = shalt.err (!%p1911_p7)
}
  0x20   : > { %s1915_s8 = scalar_lea.vmem %s217_s15, 8192  ;;  %p1923_p10 = scmp.lt.s32.totalorder %s217_s15, %s217_s15 }
  0x21   : > { %p1916_p9 = scmp.ne.s32.totalorder %s217_s15, %s1915_s8  ;;  %p1924_p8 = scmp.lt.s32.totalorder %s1915_s8, %s1915_s8 }
  0x23   : > { %p1918_p12 = pnand %p1916_p9, %p1904_p1  ;;  %p1925_p11 = por %p1924_p8, %p1923_p10 }
  0x25   : > { %p1919_p5 = pneg %p1918_p12 }
  0x27   : > { %p1926_p4 = pnand %p1925_p11, %p1919_p5 }
  0x29   : > { %1929 = shalt.err (!%p1926_p4)
}
  0x2a   : > { %s2092_s14 = smov 128   ;;  %s2093_s17 = smov 8  }
  0x2b   : > { %1670 = dma.hbm_to_vmem [thread:$0]  (!%p2199_p13), %s2430_s1, 8192, %s217_s15, [#allocation5], %s2092_s14, %s2092_s14, %s2093_s17  }
  0x2c   : > { %s1930_s23 = scalar_lea.hbm %s2432_s3, 2048 }
  0x2d   : > { %p1931_p0 = scmp.ne.s32.totalorder %s2432_s3, %s1930_s23  ;;  %p1937_p8 = scmp.lt.u32.totalorder %s1930_s23, %s2432_s3 }
  0x2f   : > { %p1933_p4 = pnand %p1931_p0, %p1904_p1 }
  0x31   : > { %p1934_p5 = pneg %p1933_p4 }
  0x33   : > { %p1939_p10 = pnand %p1937_p8, %p1934_p5 }
  0x35   : > { %1942 = shalt.err (!%p1939_p10)
}
  0x36   : > { %s1943_s15 = scalar_lea.vmem %s2203_s18, 2048  ;;  %p1951_p6 = scmp.lt.s32.totalorder %s2203_s18, %s2203_s18 }
  0x37   : > { %p1944_p11 = scmp.ne.s32.totalorder %s2203_s18, %s1943_s15  ;;  %p1952_p7 = scmp.lt.s32.totalorder %s1943_s15, %s1943_s15 }
  0x39   : > { %p1946_p2 = pnand %p1944_p11, %p1904_p1  ;;  %p1953_p9 = por %p1952_p7, %p1951_p6 }
  0x3b   : > { %p1947_p3 = pneg %p1946_p2 }
  0x3d   : > { %p1954_p12 = pnand %p1953_p9, %p1947_p3 }
  0x3f   : > { %1957 = shalt.err (!%p1954_p12)
}
  0x40   : > { %s2094_s9 = smov 64   ;;  %s2095_s14 = smov 4  }
  0x41   : > { %1673 = dma.hbm_to_vmem [thread:$0]  (!%p2199_p13), %s2432_s3, 2048, %s2203_s18, [#allocation5], %s2094_s9, %s2094_s9, %s2095_s14  }
  0x42   : > { %p1456_p0 = scmp.ge.s32.totalorder %s2056_s27, 2 }
  0x43   : > { %p2446_p1 = scmp.ne.s32.totalorder (!%p1456_p0), %s2441_s10, 0 }
  0x44   : > { %251 = sbr.rel (%p1456_p0) target bundleno = 110 (0x6e), region = 40 }
  0x4b   : > { %254 = sbr.rel (!%p2446_p1) target bundleno = 110 (0x6e), region = 44  ;;  %s255_s20 = sand.u32 (%p2446_p1), 1, %s2052_s26  }
  0x4c   : > { %s1458_s21 = sshll.u32 (%p2446_p1), %s2056_s27, 2  ;;  %s1457_s22 = sshll.u32 (%p2446_p1), %s255_s20, 7 }
  0x4d   : > { %s261_s23 = ssub.s32 (%p2446_p1), 5, %s1458_s21  ;;  %s2260_s30 = scalar_lea.sflag (%p2446_p1), [#allocation3], %s255_s20 }
  0x4e   : > { %p262_p4 = scmp.lt.s32.totalorder (%p2446_p1), %s261_s23, 4  ;;  %s259_s18 = scalar_lea.vmem (%p2446_p1), [#allocation2], %s1457_s22 }
  0x52   : > { %s2461_s23 = smov (!%p262_p4, %s261_s23), 4 }
  0x53   : > { %s2257_s24 = sshll.u32 %s2461_s23, 9 }
  0x54   : > { %s267_s16 = ssub.s32 2048, %s2257_s24 }
  0x55   : > { %268 = vsyncadd %s2260_s30, %s267_s16  ;;  %p1461_p13 = scmp.ne.s32.totalorder %s2257_s24, 0  ;;  %s1580_s10 = sshll.u32 %s2056_s27, 11 }
  0x56   : > { %s2268_s9 = scalar_lea.hbm %s2429_s0, %s1580_s10  ;;  %s274_s14 = sshll.u32 %s259_s18, 4  ;;  %s2270_s14 = int_to_ptr.vmem [resolvable:$true] %s274_s14 }
  0x57   : > { %s1958_s17 = scalar_lea.hbm %s2268_s9, %s2257_s24  ;;  %s1962_s27 = scalar_lea.hbm %s2429_s0, 2560 }
  0x58   : > { %p1959_p5 = scmp.ne.s32.totalorder %s2268_s9, %s1958_s17  ;;  %p1963_p11 = scmp.lt.u32.totalorder %s2268_s9, %s2429_s0 }
  0x59   : > { %p1964_p2 = scmp.lt.u32.totalorder %s1962_s27, %s1958_s17  ;;  %p1966_p6 = scmp.lt.u32.totalorder %s1958_s17, %s2268_s9 }
  0x5a   : > { %p1960_p8 = pnand %p1959_p5, %p1461_p13 }
  0x5b   : > { %p1965_p3 = por %p1964_p2, %p1963_p11 }
  0x5c   : > { %p1961_p10 = pneg %p1960_p8 }
  0x5d   : > { %p1967_p7 = por %p1966_p6, %p1965_p3 }
  0x5f   : > { %p1968_p9 = pnand %p1967_p7, %p1961_p10 }
  0x61   : > { %1971 = shalt.err (!%p1968_p9)
}
  0x62   : > { %s1972_s23 = scalar_lea.vmem %s2270_s14, %s2257_s24  ;;  %s2096_s16 = smov [#allocation2]  }
  0x63   : > { %p1973_p12 = scmp.ne.s32.totalorder %s2270_s14, %s1972_s23  ;;  %s1976_s18 = sshll.u32 %s2096_s16, 4  ;;  %s1977_s18 = int_to_ptr.vmem [resolvable:$false] %s1976_s18 }
  0x64   : > { %s1978_s10 = scalar_lea.vmem %s1977_s18, 4096  ;;  %p1979_p4 = scmp.lt.s32.totalorder %s2270_s14, %s1977_s18 }
  0x65   : > { %p1974_p0 = pnand %p1973_p12, %p1461_p13  ;;  %p1980_p5 = scmp.lt.s32.totalorder %s1978_s10, %s1972_s23 }
  0x67   : > { %p1975_p1 = pneg %p1974_p0  ;;  %p1981_p8 = por %p1980_p5, %p1979_p4 }
  0x69   : > { %p1982_p11 = pnand %p1981_p8, %p1975_p1 }
  0x6b   : > { %1985 = shalt.err (!%p1982_p11)
}
  0x6c   : > { %s2097_s8 = smov 512   ;;  %s2098_s15 = smov 32  }
  0x6d   : > { %280 = dma.hbm_to_vmem [thread:$0]  (%p1461_p13), %s2268_s9, %s2257_s24, %s2270_s14, %s2260_s30, %s2097_s8, %s2097_s8, %s2098_s15  }
  0x6e PF: > { %p2447_p10 = scmp.ne.s32.totalorder %s2444_s13, 0 }
  0x6f   : > { %s2300_s17 = sand.u32 (!%p2447_p10), 1, %s2048_s25   ;;  %p2448_p2 = scmp.ne.s32.totalorder (!%p2447_p10), %s2442_s11, 0 }
  0x70   : > { %286 = sbr.rel (%p2447_p10) target bundleno = 910 (0x38e), region = 48  ;;  %s1467_s19 = sshll.u32 (!%p2447_p10), %s2300_s17, 7 }
  0x71   : > { %s289_s20 = scalar_lea.sflag (!%p2447_p10), [#allocation3], %s2300_s17  ;;  %s2304_s27 = scalar_lea.vmem (!%p2447_p10), [#allocation2], %s1467_s19 }
  0x77   : > { %2035 = dma.done.wait (%p2448_p2), %s289_s20, 2048  }
  0x78   : > { %2037 = vsyncadd (%p2448_p2), %s289_s20, 4294965248  ;;  %p2449_p13 = scmp.eq.s32.totalorder %s2158_s28, 0 }
  0x7a   : > { %2039 = dma.done.wait (%p2449_p13), [#allocation5], 10240   ;;  %p2450_p3 = pmov %p2449_p13 }
  0x7b   : > { %v1782_v0 = vld [vmem:[#allocation4 + $0x4] ss:$8 sps:$4 sm:$0xff]   ;;  %v1786_v2 = vld [vmem:[#allocation4] ss:$8 sps:$4 sm:$0xff]   ;;  %v1788_v4 = vld [vmem:[#allocation4 + $0x14] ss:$8 sps:$4 sm:$0xff]  }
  0x7c   : > { %2041 = vsyncadd (%p2450_p3), [#allocation5], 4294957056  ;;  %v1784_v1 = vld [vmem:[#allocation4 + $0x104] ss:$8 sps:$4 sm:$0xff]   ;;  %762 = vmatprep.subr.bf16.mxu1 %v1782_v0  ;;  %v1787_v3 = vld [vmem:[#allocation4 + $0x100] ss:$8 sps:$4 sm:$0xff]  }
  0x7d   : > { %815 = vmatprep.subr.bf16.mxu0 %v1784_v1  ;;  %763 = vmatpush1.bf16.msra.mxu1 %v1786_v2  ;;  %v1790_v5 = vld [vmem:[#allocation4 + $0x114] ss:$8 sps:$4 sm:$0xff]   ;;  %v1792_v6 = vld [vmem:[#allocation4 + $0x10] ss:$8 sps:$4 sm:$0xff]   ;;  %v1794_v8 = vld [vmem:[#allocation4 + $0x24] ss:$8 sps:$4 sm:$0xff]  }
  0x7e   : > { %816 = vmatpush1.bf16.msra.mxu0 %v1787_v3  ;;  %764 = vmatprep.subr.bf16.mxu1 %v1788_v4  ;;  %v1793_v7 = vld [vmem:[#allocation4 + $0x110] ss:$8 sps:$4 sm:$0xff]   ;;  %v1796_v9 = vld [vmem:[#allocation4 + $0x124] ss:$8 sps:$4 sm:$0xff]   ;;  %v1798_v10 = vld [vmem:[#allocation4 + $0x20] ss:$8 sps:$4 sm:$0xff]  }
  0x7f   : > { %817 = vmatprep.subr.bf16.mxu0 %v1790_v5  ;;  %v1799_v11 = vld [vmem:[#allocation4 + $0x120] ss:$8 sps:$4 sm:$0xff]   ;;  %v1800_v12 = vld [vmem:[#allocation4 + $0x34] ss:$8 sps:$4 sm:$0xff]   ;;  %v1804_v14 = vld [vmem:[#allocation4 + $0x30] ss:$8 sps:$4 sm:$0xff]  }
  0x80   : > { %v1802_v13 = vld [vmem:[#allocation4 + $0x134] ss:$8 sps:$4 sm:$0xff]   ;;  %v1805_v15 = vld [vmem:[#allocation4 + $0x130] ss:$8 sps:$4 sm:$0xff]   ;;  %v1806_v16 = vld [vmem:[#allocation4 + $0x44] ss:$8 sps:$4 sm:$0xff]  }
  0x81   : > { %765 = vmatpush1.bf16.msra.mxu1 %v1792_v6  ;;  %v1808_v17 = vld [vmem:[#allocation4 + $0x144] ss:$8 sps:$4 sm:$0xff]   ;;  %v1810_v18 = vld [vmem:[#allocation4 + $0x40] ss:$8 sps:$4 sm:$0xff]   ;;  %v1812_v20 = vld [vmem:[#allocation4 + $0x54] ss:$8 sps:$4 sm:$0xff]  }
  0x82   : > { %818 = vmatpush1.bf16.msra.mxu0 %v1793_v7  ;;  %766 = vmatprep.subr.bf16.mxu1 %v1794_v8  ;;  %v1811_v19 = vld [vmem:[#allocation4 + $0x140] ss:$8 sps:$4 sm:$0xff]   ;;  %v1814_v21 = vld [vmem:[#allocation4 + $0x154] ss:$8 sps:$4 sm:$0xff]   ;;  %v1816_v22 = vld [vmem:[#allocation4 + $0x50] ss:$8 sps:$4 sm:$0xff]  }
  0x83   : > { %819 = vmatprep.subr.bf16.mxu0 %v1796_v9  ;;  %v1817_v23 = vld [vmem:[#allocation4 + $0x150] ss:$8 sps:$4 sm:$0xff]   ;;  %v1818_v24 = vld [vmem:[#allocation4 + $0x64] ss:$8 sps:$4 sm:$0xff]   ;;  %v1822_v26 = vld [vmem:[#allocation4 + $0x60] ss:$8 sps:$4 sm:$0xff]  }
  0x84   : > { %v1820_v25 = vld [vmem:[#allocation4 + $0x164] ss:$8 sps:$4 sm:$0xff]   ;;  %v1823_v27 = vld [vmem:[#allocation4 + $0x160] ss:$8 sps:$4 sm:$0xff]   ;;  %v1824_v28 = vld [vmem:[#allocation4 + $0x74] ss:$8 sps:$4 sm:$0xff]  }
  0x85   : > { %767 = vmatpush1.bf16.msra.mxu1 %v1798_v10  ;;  %v1826_v29 = vld [vmem:[#allocation4 + $0x174] ss:$8 sps:$4 sm:$0xff]   ;;  %v1828_v30 = vld [vmem:[#allocation4 + $0x70] ss:$8 sps:$4 sm:$0xff]   ;;  %v1830_v32 = vld [vmem:[#allocation4 + $0x84] ss:$8 sps:$4 sm:$0xff]  }
  0x86   : > { %820 = vmatpush1.bf16.msra.mxu0 %v1799_v11  ;;  %768 = vmatprep.subr.bf16.mxu1 %v1800_v12  ;;  %v1829_v31 = vld [vmem:[#allocation4 + $0x170] ss:$8 sps:$4 sm:$0xff]   ;;  %v1832_v33 = vld [vmem:[#allocation4 + $0x184] ss:$8 sps:$4 sm:$0xff]   ;;  %v1834_v34 = vld [vmem:[#allocation4 + $0x80] ss:$8 sps:$4 sm:$0xff]  }
  0x87   : > { %821 = vmatprep.subr.bf16.mxu0 %v1802_v13  ;;  %v1835_v35 = vld [vmem:[#allocation4 + $0x180] ss:$8 sps:$4 sm:$0xff]   ;;  %v1836_v36 = vld [vmem:[#allocation4 + $0x94] ss:$8 sps:$4 sm:$0xff]   ;;  %v1840_v38 = vld [vmem:[#allocation4 + $0x90] ss:$8 sps:$4 sm:$0xff]  }
  0x88   : > { %v1838_v37 = vld [vmem:[#allocation4 + $0x194] ss:$8 sps:$4 sm:$0xff]   ;;  %v1841_v39 = vld [vmem:[#allocation4 + $0x190] ss:$8 sps:$4 sm:$0xff]   ;;  %v1842_v40 = vld [vmem:[#allocation4 + $0xa4] ss:$8 sps:$4 sm:$0xff]  }
  0x89   : > { %769 = vmatpush1.bf16.msra.mxu1 %v1804_v14  ;;  %v1844_v41 = vld [vmem:[#allocation4 + $0x1a4] ss:$8 sps:$4 sm:$0xff]   ;;  %v1846_v42 = vld [vmem:[#allocation4 + $0xa0] ss:$8 sps:$4 sm:$0xff]   ;;  %v1848_v44 = vld [vmem:[#allocation4 + $0xb4] ss:$8 sps:$4 sm:$0xff]  }
  0x8a   : > { %822 = vmatpush1.bf16.msra.mxu0 %v1805_v15  ;;  %770 = vmatprep.subr.bf16.mxu1 %v1806_v16  ;;  %v1847_v43 = vld [vmem:[#allocation4 + $0x1a0] ss:$8 sps:$4 sm:$0xff]   ;;  %v1850_v45 = vld [vmem:[#allocation4 + $0x1b4] ss:$8 sps:$4 sm:$0xff]   ;;  %v1852_v50 = vld [vmem:[#allocation4 + $0xb0] ss:$8 sps:$4 sm:$0xff]  }
  0x8b   : > { %823 = vmatprep.subr.bf16.mxu0 %v1808_v17  ;;  %v343_v46 = vld [vmem:[%s2304_s27 + $0x8] sm:$0xff]  ;;  %v345_v48 = vld [vmem:[%s2304_s27 + $0x18] sm:$0xff]  ;;  %v342_v6 = vld [vmem:[%s2304_s27] sm:$0xff]  ;;  %s1470_s30 = sshll.u32 %s2300_s17, 5  ;;  %vm1190_vm0 = vcmask 130048   ;;  %p2451_p6 = scmp.ne.s32.totalorder %s2443_s12, 0 }
  0x8c   : > { %v347_v47 = vld [vmem:[%s2304_s27 + $0x28] sm:$0xff]  ;;  %v349_v49 = vld [vmem:[%s2304_s27 + $0x38] sm:$0xff]  ;;  %v346_v7 = vld [vmem:[%s2304_s27 + $0x20] sm:$0xff]  ;;  %s2364_s21 = scalar_lea.vmem [#allocation7], %s1470_s30   ;;  %s1562_s17 = sshll.u32 (%p2451_p6), %s2158_s28, 2 }
  0x8d   : > { %771 = vmatpush1.bf16.msra.mxu1 %v1810_v18  ;;  %v1853_v51 = vld [vmem:[#allocation4 + $0x1b0] ss:$8 sps:$4 sm:$0xff]   ;;  %v359_v52 = vpack.c.bf16 %v347_v47, %v343_v46  ;;  %v361_v53 = vpack.c.bf16 %v349_v49, %v345_v48  ;;  %v1854_v54 = vld [vmem:[#allocation4 + $0xc4] ss:$8 sps:$4 sm:$0xff]   ;;  %v1858_v56 = vld [vmem:[#allocation4 + $0xc0] ss:$8 sps:$4 sm:$0xff]   ;;  %v358_v15 = vpack.c.bf16 %v346_v7, %v342_v6 }
  0x8e   : > { %824 = vmatpush1.bf16.msra.mxu0 %v1811_v19  ;;  %772 = vmatprep.subr.bf16.mxu1 %v1812_v20  ;;  %v1856_v55 = vld [vmem:[#allocation4 + $0x1c4] ss:$8 sps:$4 sm:$0xff]   ;;  %v1859_v57 = vld [vmem:[#allocation4 + $0x1c0] ss:$8 sps:$4 sm:$0xff]   ;;  %v1860_v58 = vld [vmem:[#allocation4 + $0xd4] ss:$8 sps:$4 sm:$0xff]  }
  0x8f   : > { %825 = vmatprep.subr.bf16.mxu0 %v1814_v21  ;;  %794 = vmatprep.mubr.bf16.mxu1 %v359_v52  ;;  %v1862_v59 = vld [vmem:[#allocation4 + $0x1d4] ss:$8 sps:$4 sm:$0xff]   ;;  %v1864_v60 = vld [vmem:[#allocation4 + $0xd0] ss:$8 sps:$4 sm:$0xff]   ;;  %v1866_v62 = vld [vmem:[#allocation4 + $0xe4] ss:$8 sps:$4 sm:$0xff]  }
  0x90   : > { %847 = vmatprep.mubr.bf16.mxu0 %v361_v53  ;;  %v1865_v61 = vld [vmem:[#allocation4 + $0x1d0] ss:$8 sps:$4 sm:$0xff]   ;;  %v1868_v63 = vld [vmem:[#allocation4 + $0x1e4] ss:$8 sps:$4 sm:$0xff]   ;;  %v1870_v0 = vld [vmem:[#allocation4 + $0xe0] ss:$8 sps:$4 sm:$0xff]  }
  0x91   : > { %773 = vmatpush1.bf16.msra.mxu1 %v1816_v22  ;;  %v1871_v1 = vld [vmem:[#allocation4 + $0x1e0] ss:$8 sps:$4 sm:$0xff]   ;;  %v1872_v2 = vld [vmem:[#allocation4 + $0xf4] ss:$8 sps:$4 sm:$0xff]   ;;  %v1876_v4 = vld [vmem:[#allocation4 + $0xf0] ss:$8 sps:$4 sm:$0xff]  }
  0x92   : > { %826 = vmatpush1.bf16.msra.mxu0 %v1817_v23  ;;  %774 = vmatprep.subr.bf16.mxu1 %v1818_v24  ;;  %v1874_v3 = vld [vmem:[#allocation4 + $0x1f4] ss:$8 sps:$4 sm:$0xff]   ;;  %v1877_v5 = vld [vmem:[#allocation4 + $0x1f0] ss:$8 sps:$4 sm:$0xff]   ;;  %v351_v10 = vld [vmem:[%s2304_s27 + $0x48] sm:$0xff]  ;;  %s1581_s22 = sshll.u32 (%p2451_p6), %s2158_s28, 5 }
  0x93   : > { %827 = vmatprep.subr.bf16.mxu0 %v1820_v25  ;;  %v344_v8 = vld [vmem:[%s2304_s27 + $0x10] sm:$0xff]  ;;  %v355_v11 = vld [vmem:[%s2304_s27 + $0x68] sm:$0xff]  ;;  %v353_v12 = vld [vmem:[%s2304_s27 + $0x58] sm:$0xff]  ;;  %s1203_s23 = ssub.s32 (%p2451_p6), 5, %s1562_s17  ;;  %s2377_s10 = scalar_lea.vmem (%p2451_p6), %s2436_s7, %s1581_s22  }
  0x94   : > { %v348_v9 = vld [vmem:[%s2304_s27 + $0x30] sm:$0xff]  ;;  %v357_v13 = vld [vmem:[%s2304_s27 + $0x78] sm:$0xff]  ;;  %v1878_v14 = vld [vmem:[#allocation6 + $0x40] sm:$0xff]   ;;  %v363_v18 = vpack.c.bf16 %v355_v11, %v351_v10  ;;  %p1204_p7 = scmp.lt.s32.totalorder (%p2451_p6), %s1203_s23, 4 }
  0x95   : > { %775 = vmatpush1.bf16.msra.mxu1 %v1822_v26  ;;  %v360_v16 = vpack.c.bf16 %v348_v9, %v344_v8  ;;  %v1879_v17 = vld [vmem:[#allocation6] sm:$0xff]   ;;  %v365_v19 = vpack.c.bf16 %v357_v13, %v353_v12  ;;  %v1880_v20 = vld [vmem:[#allocation6 + $0x48] sm:$0xff]   ;;  %v352_v23 = vld [vmem:[%s2304_s27 + $0x50] sm:$0xff] }
  0x96   : > { %828 = vmatpush1.bf16.msra.mxu0 %v1823_v27  ;;  %776 = vmatprep.subr.bf16.mxu1 %v1824_v28  ;;  %v350_v21 = vld [vmem:[%s2304_s27 + $0x40] sm:$0xff]  ;;  %v356_v24 = vld [vmem:[%s2304_s27 + $0x70] sm:$0xff]  ;;  %v1881_v25 = vld [vmem:[#allocation6 + $0x8] sm:$0xff]  }
  0x97   : > { %829 = vmatprep.subr.bf16.mxu0 %v1826_v29  ;;  %v354_v22 = vld [vmem:[%s2304_s27 + $0x60] sm:$0xff]  ;;  %v1882_v26 = vld [vmem:[#allocation6 + $0x50] sm:$0xff]   ;;  %v364_v28 = vpack.c.bf16 %v356_v24, %v352_v23 }
  0x98   : > { %v362_v27 = vpack.c.bf16 %v354_v22, %v350_v21  ;;  %v1883_v29 = vld [vmem:[#allocation6 + $0x10] sm:$0xff]   ;;  %v430_v46 = vld [vmem:[%s2431_s2] sm:$0x3] }
  0x99   : > { %777 = vmatpush1.bf16.msra.mxu1 %v1828_v30  ;;  %v1884_v30 = vld [vmem:[#allocation6 + $0x58] sm:$0xff]  }
  0x9a   : > { %830 = vmatpush1.bf16.msra.mxu0 %v1829_v31  ;;  %778 = vmatprep.subr.bf16.mxu1 %v1830_v32  ;;  %v1885_v31 = vld [vmem:[#allocation6 + $0x18] sm:$0xff]   ;;  %v1886_v32 = vld [vmem:[#allocation6 + $0x60] sm:$0xff]  }
  0x9b   : > { %831 = vmatprep.subr.bf16.mxu0 %v1832_v33  ;;  %v1887_v33 = vld [vmem:[#allocation6 + $0x20] sm:$0xff]  }
  0x9d   : > { %779 = vmatpush1.bf16.msra.mxu1 %v1834_v34  ;;  %v1888_v34 = vld [vmem:[#allocation6 + $0x68] sm:$0xff]  }
  0x9e   : > { %832 = vmatpush1.bf16.msra.mxu0 %v1835_v35  ;;  %780 = vmatprep.subr.bf16.mxu1 %v1836_v36  ;;  %v1889_v35 = vld [vmem:[#allocation6 + $0x28] sm:$0xff]   ;;  %v1890_v36 = vld [vmem:[#allocation6 + $0x70] sm:$0xff]  }
  0x9f   : > { %833 = vmatprep.subr.bf16.mxu0 %v1838_v37  ;;  %v1891_v37 = vld [vmem:[#allocation6 + $0x30] sm:$0xff]  }
  0xa1   : > { %781 = vmatpush1.bf16.msra.mxu1 %v1840_v38  ;;  %v1892_v38 = vld [vmem:[#allocation6 + $0x78] sm:$0xff]  }
  0xa2   : > { %834 = vmatpush1.bf16.msra.mxu0 %v1841_v39  ;;  %782 = vmatprep.subr.bf16.mxu1 %v1842_v40  ;;  %v1893_v39 = vld [vmem:[#allocation6 + $0x38] sm:$0xff]   ;;  %v1894_v40 = vld [vmem:[%s2434_s5] sm:$0xff]  }
  0xa3   : > { %835 = vmatprep.subr.bf16.mxu0 %v1844_v41  ;;  %v1895_v41 = vld [vmem:[%s2434_s5 + $0x8] sm:$0xff]  }
  0xa5   : > { %783 = vmatpush1.bf16.msra.mxu1 %v1846_v42  ;;  %v1896_v42 = vld [vmem:[%s2434_s5 + $0x10] sm:$0xff]  }
  0xa6   : > { %836 = vmatpush1.bf16.msra.mxu0 %v1847_v43  ;;  %784 = vmatprep.subr.bf16.mxu1 %v1848_v44  ;;  %v432_v43 = vlaneseq }
  0xa7   : > { %837 = vmatprep.subr.bf16.mxu0 %v1850_v45 }
  0xa8   : > { %v433_v44 = vshrl.u32 %v432_v43, 7 }
  0xa9   : > { %785 = vmatpush1.bf16.msra.mxu1 %v1852_v50 }
  0xaa   : > { %838 = vmatpush1.bf16.msra.mxu0 %v1853_v51  ;;  %786 = vmatprep.subr.bf16.mxu1 %v1854_v54  ;;  %v434_v45 = vsub.s32 0, %v433_v44  ;;  %v438_v47 = vsub.s32 1, %v433_v44 }
  0xab   : > { %839 = vmatprep.subr.bf16.mxu0 %v1856_v55 }
  0xac   : > { %v435_v48 = vrot.slane %v430_v46, %v434_v45  ;;  %v439_v49 = vrot.slane %v430_v46, %v438_v47 }
  0xad   : > { %787 = vmatpush1.bf16.msra.mxu1 %v1858_v56 }
  0xae   : > { %840 = vmatpush1.bf16.msra.mxu0 %v1859_v57  ;;  %788 = vmatprep.subr.bf16.mxu1 %v1860_v58 }
  0xaf   : > { %841 = vmatprep.subr.bf16.mxu0 %v1862_v59 }
  0xb1   : > { %789 = vmatpush1.bf16.msra.mxu1 %v1864_v60 }
  0xb2   : > { %842 = vmatpush1.bf16.msra.mxu0 %v1865_v61  ;;  %790 = vmatprep.subr.bf16.mxu1 %v1866_v62 }
  0xb3   : > { %843 = vmatprep.subr.bf16.mxu0 %v1868_v63 }
  0xb5   : > { %791 = vmatpush1.bf16.msra.mxu1 %v1870_v0 }
  0xb6   : > { %844 = vmatpush1.bf16.msra.mxu0 %v1871_v1  ;;  %792 = vmatprep.subr.bf16.mxu1 %v1872_v2 }
  0xb7   : > { %845 = vmatprep.subr.bf16.mxu0 %v1874_v3 }
  0xb9   : > { %793 = vmatpush1.bf16.msra.mxu1 %v1876_v4 }
  0xba   : > { %846 = vmatpush1.bf16.msra.mxu0 %v1877_v5  ;;  %1622 = vmatprep.subr.bf16.mxu1 %v1894_v40 }
  0xbb   : > { %1584 = vmatprep.subr.bf16.mxu0 %v1878_v14 }
  0xbc   : > { %795 = vmatmul.mubr.bf16.vlgmr.msra.gmra.mrb[0].mxu1 %v358_v15 }
  0xbd   : > { %848 = vmatmul.mubr.bf16.vlgmr.msra.gmra.mrb[0].mxu0 %v360_v16  ;;  %804 = vmatprep.mubr.bf16.mxu1 %v363_v18 }
  0xbe   : > { %857 = vmatprep.mubr.bf16.mxu0 %v365_v19  ;;  %1585 = vmatpush3.bf16.msra.mxu0 %v1879_v17 }
  0xbf   : > { %1586 = vmatprep.subr.bf16.mxu0 %v1880_v20  ;;  %1623 = vmatpush3.bf16.msra.mxu1 %v1894_v40 }
  0xc0   : > { %1624 = vmatprep.subr.bf16.mxu1 %v1895_v41 }
  0xc2   : > { %1587 = vmatpush3.bf16.msra.mxu0 %v1881_v25 }
  0xc3   : > { %1588 = vmatprep.subr.bf16.mxu0 %v1882_v26  ;;  %1625 = vmatpush3.bf16.msra.mxu1 %v1895_v41 }
  0xc4   : > { %805 = vmatmul.mubr.bf16.gmra.mrb[4].mxu1 %v362_v27  ;;  %1626 = vmatprep.subr.bf16.mxu1 %v1896_v42 }
  0xc5   : > { %858 = vmatmul.mubr.bf16.gmra.mrb[4].mxu0 %v364_v28 }
  0xc6   : > { %1589 = vmatpush3.bf16.msra.mxu0 %v1883_v29 }
  0xc7   : > { %1590 = vmatprep.subr.bf16.mxu0 %v1884_v30  ;;  %1627 = vmatpush3.bf16.msra.mxu1 %v1896_v42  ;;  %v1897_v30 = vld [vmem:[%s2434_s5 + $0x18] sm:$0xff]  }
  0xc8   : > { %1628 = vmatprep.subr.bf16.mxu1 %v1897_v30 }
  0xca   : > { %1591 = vmatpush3.bf16.msra.mxu0 %v1885_v31  ;;  %v1898_v31 = vld [vmem:[%s2434_s5 + $0x20] sm:$0xff]  }
  0xcb   : > { %1592 = vmatprep.subr.bf16.mxu0 %v1886_v32  ;;  %1629 = vmatpush3.bf16.msra.mxu1 %v1897_v30  ;;  %v1899_v32 = vld [vmem:[%s2434_s5 + $0x28] sm:$0xff]  }
  0xcc   : > { %1630 = vmatprep.subr.bf16.mxu1 %v1898_v31 }
  0xce   : > { %1593 = vmatpush3.bf16.msra.mxu0 %v1887_v33  ;;  %v1900_v33 = vld [vmem:[%s2434_s5 + $0x30] sm:$0xff]  }
  0xcf   : > { %1594 = vmatprep.subr.bf16.mxu0 %v1888_v34  ;;  %1631 = vmatpush3.bf16.msra.mxu1 %v1898_v31  ;;  %v1901_v34 = vld [vmem:[%s2434_s5 + $0x38] sm:$0xff]  }
  0xd0   : > { %1632 = vmatprep.subr.bf16.mxu1 %v1899_v32 }
  0xd2   : > { %1595 = vmatpush3.bf16.msra.mxu0 %v1889_v35 }
  0xd3   : > { %1596 = vmatprep.subr.bf16.mxu0 %v1890_v36  ;;  %1633 = vmatpush3.bf16.msra.mxu1 %v1899_v32  ;;  %v1535_v36 = vld [vmem:[%s2433_s4] ss:$0 sm:$0xff] }
  0xd4   : > { %1634 = vmatprep.subr.bf16.mxu1 %v1900_v33 }
  0xd6   : > { %1597 = vmatpush3.bf16.msra.mxu0 %v1891_v37 }
  0xd7   : > { %1598 = vmatprep.subr.bf16.mxu0 %v1892_v38  ;;  %1635 = vmatpush3.bf16.msra.mxu1 %v1900_v33 }
  0xd8   : > { %1636 = vmatprep.subr.bf16.mxu1 %v1901_v34 }
  0xda   : > { %1599 = vmatpush3.bf16.msra.mxu0 %v1893_v39 }
  0xdb   : > { %1637 = vmatpush3.bf16.msra.mxu1 %v1901_v34 }
 0x18f   : > { %v796_v50 = vpop.f32.mrb[0].mxu1 }
 0x190   : > { %v849_v51 = vpop.f32.mrb[0].mxu0  ;;  %v797_v52 = vadd.f32 %v796_v50, %v435_v48  ;;  %v798_v53 = vpop.f32.mrb[1].mxu1 }
 0x191   : > { %v851_v54 = vpop.f32.mrb[1].mxu0  ;;  %v799_v55 = vadd.f32 %v798_v53, %v439_v49  ;;  %v800_v56 = vpop.f32.mrb[2].mxu1 }
 0x192   : > { %v853_v57 = vpop.f32.mrb[2].mxu0  ;;  %v850_v58 = vadd.f32 %v849_v51, %v797_v52  ;;  %v801_v59 = vadd.f32 %v800_v56, %v435_v48  ;;  %v802_v60 = vpop.f32.mrb[3].mxu1 }
 0x193   : > { %v855_v61 = vpop.f32.mrb[3].mxu0  ;;  %v852_v62 = vadd.f32 %v851_v54, %v799_v55  ;;  %v803_v63 = vadd.f32 %v802_v60, %v439_v49 }
 0x194   : > { %v854_v0 = vadd.f32 %v853_v57, %v801_v59  ;;  %v868_v2 = vmax.f32 %v850_v58, 0.0  ;;  %v1552_v58 = vld [vmem:[%s2435_s6] ss:$0 sm:$0xff] }
 0x195   : > { %v856_v1 = vadd.f32 %v855_v61, %v803_v63  ;;  %v869_v4 = vmax.f32 %v852_v62, 0.0 }
 0x196   : > { %v870_v3 = vmax.f32 %v854_v0, 0.0 }
 0x197   : > { %v871_v5 = vmax.f32 %v856_v1, 0.0  ;;  %v806_v6 = vpop.f32.mrb[4].mxu1 }
 0x198   : > { %v859_v7 = vpop.f32.mrb[4].mxu0  ;;  %v876_v8 = vpack.c.bf16 %v870_v3, %v868_v2  ;;  %v807_v9 = vadd.f32 %v806_v6, %v435_v48  ;;  %v808_v10 = vpop.f32.mrb[5].mxu1 }
 0x199   : > { %v861_v11 = vpop.f32.mrb[5].mxu0  ;;  %v877_v12 = vpack.c.bf16 %v871_v5, %v869_v4  ;;  %v809_v13 = vadd.f32 %v808_v10, %v439_v49  ;;  %v810_v14 = vpop.f32.mrb[6].mxu1 }
 0x19a   : > { %v863_v15 = vpop.f32.mrb[6].mxu0  ;;  %v860_v16 = vadd.f32 %v859_v7, %v807_v9  ;;  %v811_v17 = vadd.f32 %v810_v14, %v435_v48  ;;  %v812_v18 = vpop.f32.mrb[7].mxu1 }
 0x19b   : > { %v865_v19 = vpop.f32.mrb[7].mxu0  ;;  %v862_v20 = vadd.f32 %v861_v11, %v809_v13  ;;  %v813_v21 = vadd.f32 %v812_v18, %v439_v49  ;;  %1047 = vmatprep.mubr.bf16.mxu0 %v877_v12 }
 0x19c   : > { %v864_v22 = vadd.f32 %v863_v15, %v811_v17  ;;  %1048 = vmatmul.mubr.bf16.vlgmr.msra.gmra.mrb[8].mxu0 %v876_v8  ;;  %v872_v24 = vmax.f32 %v860_v16, 0.0 }
 0x19d   : > { %v866_v23 = vadd.f32 %v865_v19, %v813_v21  ;;  %v873_v26 = vmax.f32 %v862_v20, 0.0 }
 0x19e   : > { %v874_v25 = vmax.f32 %v864_v22, 0.0 }
 0x19f   : > { %v875_v27 = vmax.f32 %v866_v23, 0.0 }
 0x1a0   : > { %v878_v28 = vpack.c.bf16 %v874_v25, %v872_v24 }
 0x1a1   : > { %v879_v29 = vpack.c.bf16 %v875_v27, %v873_v26 }
 0x1a3   : > { %1055 = vmatprep.mubr.bf16.mxu0 %v879_v29 }
 0x1a4   : > { %1056 = vmatmul.mubr.bf16.gmra.mrb[12].mxu0 %v878_v28 }
 0x26f   : > { %v1600_v35 = vpop.f32.mrb[8].mxu0 }
 0x270   : > { %v1601_v37 = vpop.f32.mrb[9].mxu0 }
 0x271   : > { %v1602_v38 = vadd.f32 %v1601_v37, %v1600_v35  ;;  %v1603_v39 = vpop.f32.mrb[10].mxu0 }
 0x272   : > { %v1604_v40 = vpop.f32.mrb[11].mxu0 }
 0x273   : > { %v1050_v41 = vadd.f32 %v1602_v38, %v1535_v36  ;;  %v1605_v42 = vadd.f32 %v1604_v40, %v1603_v39 }
 0x275   : > { %v1053_v43 = vadd.f32 %v1605_v42, %v1535_v36  ;;  %v1064_v44 = vmax.f32 %v1050_v41, 0.0 }
 0x277   : > { %v1065_v45 = vmax.f32 %v1053_v43, 0.0  ;;  %v1606_v46 = vpop.f32.mrb[12].mxu0 }
 0x278   : > { %v1607_v47 = vpop.f32.mrb[13].mxu0 }
 0x279   : > { %v1608_v48 = vadd.f32 %v1607_v47, %v1606_v46  ;;  %v1609_v49 = vpop.f32.mrb[14].mxu0  ;;  %v1068_v50 = vpack.c.bf16 %v1065_v45, %v1064_v44 }
 0x27a   : > { %v1610_v51 = vpop.f32.mrb[15].mxu0 }
 0x27b   : > { %v1058_v52 = vadd.f32 %v1608_v48, %v1535_v36  ;;  %v1611_v53 = vadd.f32 %v1610_v51, %v1609_v49  ;;  %1638 = vmatprep.mubr.bf16.mxu1 %v1068_v50 }
 0x27d   : > { %v1061_v54 = vadd.f32 %v1611_v53, %v1535_v36  ;;  %v1066_v55 = vmax.f32 %v1058_v52, 0.0 }
 0x27f   : > { %v1067_v56 = vmax.f32 %v1061_v54, 0.0 }
 0x281   : > { %v1069_v57 = vpack.c.bf16 %v1067_v56, %v1066_v55 }
 0x283   : > { %1639 = vmatmul.mubr.bf16.vlgmr.msra.gmra.mrb[8].mxu1 %v1069_v57 }
 0x356   : > { %v1640_v59 = vpop.f32.mrb[8].mxu1  ;;  %1201 = sbr.rel (!%p2451_p6) target bundleno = 910 (0x38e), region = 64 }
 0x357   : > { %v1184_v60 = vadd.f32 %v1640_v59, %v1552_v58  ;;  %v1175_v61 = vpop.f32.mrb[9].mxu1 }
 0x358   : > { %v1176_v62 = vadd.f32 %v1552_v58, %v1175_v61  ;;  %v1641_v63 = vpop.f32.mrb[10].mxu1 }
 0x359   : > { %1193 = vst.msk [vmem:[%s2364_s21 + $0x10] sm:$0xff] %vm1190_vm0, %v1184_v60  ;;  %v1187_v0 = vadd.f32 %v1641_v63, %v1552_v58  ;;  %v1178_v1 = vpop.f32.mrb[11].mxu1 }
 0x35a   : > { %1191 = vst.msk [vmem:[%s2364_s21] sm:$0xff] %vm1190_vm0, %v1176_v62  ;;  %v1179_v2 = vadd.f32 %v1552_v58, %v1178_v1 }
 0x35b   : > { %1194 = vst.msk [vmem:[%s2364_s21 + $0x18] sm:$0xff] %vm1190_vm0, %v1187_v0 }
 0x35c   : > { %1192 = vst.msk [vmem:[%s2364_s21 + $0x8] sm:$0xff] %vm1190_vm0, %v1179_v2 }
 0x35d   : > { %s2463_s23 = smov (!%p1204_p7, %s1203_s23), 4 }
 0x35e   : > { %s1563_s8 = sshll.u32 %s2463_s23, 7 }
 0x35f   : > { %p1566_p9 = scmp.eq.s32.totalorder %s1563_s8, 0 }
 0x360   : > { %s2383_s12 = sshrl.u32 (!%p1566_p9), %s2463_s23, 2 }
 0x361   : > { %1212 = sbr.rel (%p1566_p9) target bundleno = 910 (0x38e), region = 68  ;;  %p1567_p12 = scmp.le.s32.totalorder (!%p1566_p9), %s2383_s12, 0 }
 0x368   : > { %1387 = sbr.rel (%p1567_p12) target bundleno = 889 (0x379), region = 150  ;;  %s2452_s28 = smov (!%p1567_p12), %s2377_s10 }
 0x369   : > { %s2453_s15 = smov (!%p1567_p12), %s2364_s21  ;;  %s2392_s19 = smov (!%p1567_p12), 0  }
 0x36a   : > { %s2070_s20 = smov (!%p1567_p12), 0  }
 0x36f LB: >> { %v1280_v3 = vld [vmem:[%s2064_s15] sm:$0xff]  ;;  %v1282_v4 = vld [vmem:[%s2064_s15 + $0x8] sm:$0xff]  ;;  %v1284_v5 = vld [vmem:[%s2064_s15 + $0x10] sm:$0xff]  ;;  %s1288_s27 = sadd.s32 1, %s2068_s19  ;;  %s1274_s20 = sadd.s32 1, %s2072_s20   ;;  %s2072_s20 = sphi %s2070_s20, %s1274_s20   ;;  %s2068_s19 = sphi %s2392_s19, %s2454_s19   ;;  %s2064_s15 = sphi %s2453_s15, %s1293_s15   ;;  %s2060_s28 = sphi %s2452_s28, %s1294_s28  }
 0x370   : >> { %1281 = vst [vmem:[%s2060_s28] sm:$0xff] %v1280_v3  ;;  %1283 = vst [vmem:[%s2060_s28 + $0x8] sm:$0xff] %v1282_v4  ;;  %v1286_v6 = vld [vmem:[%s2064_s15 + $0x18] sm:$0xff]  ;;  %p1289_p0 = scmp.ge.s32.totalorder %s1288_s27, %s2383_s12  ;;  %p1273_p1 = scmp.ge.s32.totalorder %s1274_s20, %s2383_s12 }
 0x371   : >> { %1285 = vst [vmem:[%s2060_s28 + $0x10] sm:$0xff] %v1284_v5  ;;  %1287 = vst [vmem:[%s2060_s28 + $0x18] sm:$0xff] %v1286_v6 }
 0x372   : >> { %s2465_s27 = smov (%p1289_p0, %s1288_s27), 0  ;;  %1276 = sbr.rel (!%p1273_p1) target bundleno = 879 (0x36f), region = 156 }
 0x373   : >> { %s1568_s11 = sshll.u32 %s2465_s27, 5  ;;  %s2454_s19 = smov %s2465_s27 }
 0x374   : >> { %s1293_s15 = scalar_lea.vmem %s2364_s21, %s1568_s11 [#allocation7]   ;;  %s1294_s28 = scalar_lea.vmem %s2377_s10, %s1568_s11  }
 0x379 PF: > { %s2408_s13 = sand.u32 3, %s2463_s23   ;;  %s1582_s24 = sshll.u32 %s2383_s12, 5 }
 0x37a   : > { %s1299_s30 = scalar_lea.vmem %s2364_s21, %s1582_s24 [#allocation7]   ;;  %s1301_s9 = scalar_lea.vmem %s2377_s10, %s1582_s24  }
 0x37b   : > { %p1573_p4 = scmp.le.s32.totalorder %s2408_s13, 0 }
 0x37c   : > { %s2074_s14 = smov (!%p1573_p4), %s1301_s9   ;;  %s2078_s17 = smov (!%p1573_p4), %s1299_s30  }
 0x37d   : > { %1401 = sbr.rel (%p1573_p4) target bundleno = 910 (0x38e), region = 161  ;;  %s2082_s22 = smov (!%p1573_p4), 0  }
 0x37e   : > { %s2086_s16 = smov (!%p1573_p4), 0  }
 0x384 LB: >> { %v1311_v7 = vld [vmem:[%s2080_s17] sm:$0xff]  ;;  %s1313_s23 = sadd.s32 1, %s2084_s22  ;;  %s1305_s16 = sadd.s32 1, %s2088_s16   ;;  %s2088_s16 = sphi %s2086_s16, %s1305_s16   ;;  %s2084_s22 = sphi %s2082_s22, %s2083_s22   ;;  %s2080_s17 = sphi %s2078_s17, %s1318_s17   ;;  %s2076_s14 = sphi %s2074_s14, %s1319_s14  }
 0x385   : >> { %1312 = vst [vmem:[%s2076_s14] sm:$0xff] %v1311_v7  ;;  %p1314_p5 = scmp.ge.s32.totalorder %s1313_s23, %s2408_s13  ;;  %p1304_p8 = scmp.ge.s32.totalorder %s1305_s16, %s2408_s13 }
 0x387   : >> { %s2467_s23 = smov (%p1314_p5, %s1313_s23), 0  ;;  %1307 = sbr.rel (!%p1304_p8) target bundleno = 900 (0x384), region = 167 }
 0x388   : >> { %s1574_s21 = sshll.u32 %s2467_s23, 3  ;;  %s2083_s22 = smov %s2467_s23  }
 0x389   : >> { %s1318_s17 = scalar_lea.vmem %s1299_s30, %s1574_s21 [#allocation7]   ;;  %s1319_s14 = scalar_lea.vmem %s1301_s9, %s1574_s21  }
 0x38e PF: > { %s2455_s18 = sld [smem:[#allocation10_spill]]  ;;  %p18_p11 = scmp.ge.s32.totalorder %s2161_s29, 4  }
 0x38f   : > { %s2456_s24 = smov %s2048_s25  ;;  %s2457_s25 = smov %s2052_s26 }
 0x390   : > { %s2459_s27 = smov %s2161_s29  ;;  %20 = sbr.rel (!%p18_p11) target bundleno = 4 (0x4), region = 178 }
 0x394   : > { %s2458_s26 = smov %s2455_s18 }
 0x397   :  { %1335 = vsyncpa [#allocation3], 1 }
 0x398   :  { %1337 = vsyncpa [#allocation3 + $0x1], 1 }
 0x399   :  { %1338 = vsyncpa [#allocation5], 1 }

</bundles_post_ra>
